<compile_context>
chip_gen: v7x
topology: tpu7x:2x2x1
jax: 0.10.0
libtpu: 0.0.40
codegen_flags: <defaults>
</compile_context>

<pallas_src>
import jax
import jax.numpy as jnp
from jax.experimental import pallas as pl
from jax.experimental.pallas import tpu as pltpu

LANE = 128      # TPU lane width (last-dim tiling unit)
SUBLANE = 8     # TPU sublane width (second-to-last-dim tiling unit)


def _round_up(x, m):
    return ((x + m - 1) // m) * m


# ----------------------------------------------------------------------------
# Pallas kernel: fused MultiClassHead forward (BN already folded into weights)
#   x: [block_b, D]  bf16
#   for h in range(head_size):
#       x = relu(x @ W1[h] + b1[h])          # bf16 matmul, f32 accumulate, f32 epilogue
#   out = x @ W2 + b2                        # -> [block_b, Cp], lane-dense f32 store
# ----------------------------------------------------------------------------
def _mlp_head_kernel(x_ref, w1_ref, b1_ref, w2_ref, b2_ref, out_ref):
    x = x_ref[...]                                     # bf16 activations (block_b, D)
    head_size = w1_ref.shape[0]
    # TODO(synk): for very large head_size*D*D weight stacks (>~40 MiB) stream W1 one
    # layer at a time over a second "arbitrary" grid axis (v7x has only 64 MiB VMEM); for
    # EmbClassifier's projection_dim / head_size the full stack is a few MiB at most.
    for h in range(head_size):                         # static unroll over head_size
        acc = jnp.dot(x, w1_ref[h],
                      preferred_element_type=jnp.float32)       # MXU, f32 accumulate
        x = jnp.maximum(acc + b1_ref[h], 0.0).astype(jnp.bfloat16)  # f32 bias+ReLU (BN folded)
    out = jnp.dot(x, w2_ref[...],
                  preferred_element_type=jnp.float32) + b2_ref[...]
    out_ref[...] = out.astype(out_ref.dtype)           # lane-dense (Cp = k*128) store


# ----------------------------------------------------------------------------
# Parameter prep: fold eval-mode BatchNorm1d into the following layer's weights/bias,
# pad only the class dim C up to a multiple of 128, cast weights to bf16.
# ----------------------------------------------------------------------------
def fold_and_prepare_params(params):
    w1, b1 = params["w1"], params["b1"]                # (H, D, D), (H, 1, D)
    s, t = params["bn_scale"], params["bn_shift"]      # (H, 1, D), (H, 1, D)
    w2, b2 = params["w2"], params["b2"]                # (D, C), (1, C)
    H, D, _ = w1.shape
    C = w2.shape[1]

    # Exact algebraic fold of (y * s[h] + t[h]) into the next matmul's weights/bias:
    #   W1'[h] = diag(s[h-1]) @ W1[h],  b1'[h] = b1[h] + t[h-1] @ W1[h]   (h >= 1)
    #   W2'    = diag(s[H-1]) @ W2,     b2'    = b2    + t[H-1] @ W2
    w1_f = [w1[0]]
    b1_f = [b1[0]]
    for h in range(1, H):
        w1_f.append(s[h - 1].reshape(D, 1) * w1[h])
        b1_f.append(b1[h] + t[h - 1] @ w1[h])
    w1_f = jnp.stack(w1_f)
    b1_f = jnp.stack(b1_f)
    w2_f = s[H - 1].reshape(D, 1) * w2
    b2_f = b2 + t[H - 1] @ w2

    Cp = _round_up(C, LANE)
    w2_p = jnp.zeros((D, Cp), jnp.float32).at[:, :C].set(w2_f)
    b2_p = jnp.zeros((1, Cp), jnp.float32).at[:, :C].set(b2_f)

    return {
        "w1": w1_f.astype(jnp.bfloat16),   # bf16 weights -> fast MXU path, half VMEM/DMA
        "b1": b1_f.astype(jnp.float32),    # f32 biases (BN folded in)
        "w2": w2_p.astype(jnp.bfloat16),
        "b2": b2_p,
        "D": D, "C": C, "Cp": Cp,
    }


# ----------------------------------------------------------------------------
# Wrapper: batch-gridded, pipelined pallas_call
# ----------------------------------------------------------------------------
def emb_classifier_head(emb, prepared, *, max_block_b=512):
    """Runs the `classify` head of EmbClassifier on an embedding batch.

    emb: [B, D] float32 (the projected embedding proj_h)
    returns: [B, C] float32 class scores (logits)
    """
    B, D = emb.shape
    assert D == prepared["D"], "embedding dim does not match prepared params"
    H = prepared["w1"].shape[0]
    Cp, C = prepared["Cp"], prepared["C"]

    # Batch tile: multiple of 8 sublanes; force >= 2 blocks once B >= 16 so the
    # "parallel" batch axis can split across v7x's two TensorCores.
    if B >= 16:
        block_b = min(max_block_b, _round_up((B + 1) // 2, SUBLANE))
    else:
        block_b = min(max_block_b, _round_up(B, SUBLANE))
    Bp = _round_up(B, block_b)

    x = emb.astype(jnp.bfloat16)                       # bf16 activations: half the DMA bytes
    if Bp != B:
        x = jnp.pad(x, ((0, Bp - B), (0, 0)))          # pad batch rows only; D untouched

    # VMEM budget from the actual buffers (+headroom), capped well below v7x's 64 MiB/TC.
    weight_bytes = (int(prepared["w1"].size) * 2 + int(prepared["b1"].size) * 4
                    + int(prepared["w2"].size) * 2 + int(prepared["b2"].size) * 4)
    act_bytes = 2 * block_b * D * 2                    # double-buffered bf16 input blocks
    out_bytes = 2 * block_b * Cp * 4                   # double-buffered f32 output blocks
    needed = weight_bytes + act_bytes + out_bytes
    vmem_limit = int(min(max(2 * needed + (2 << 20), 8 << 20), 48 << 20))

    flops = 2 * Bp * D * D * H + 2 * Bp * D * Cp
    bytes_accessed = Bp * D * 2 + Bp * Cp * 4 + weight_bytes

    resident = pl.Buffered(1)   # grid-invariant weights/biases: single-buffer, stay resident
    grid = (Bp // block_b,)
    out = pl.pallas_call(
        _mlp_head_kernel,
        out_shape=jax.ShapeDtypeStruct((Bp, Cp), jnp.float32),
        grid_spec=pltpu.PrefetchScalarGridSpec(
            num_scalar_prefetch=0,
            grid=grid,
            in_specs=[
                # activations: pipelined (double-buffered) over the batch grid axis
                pl.BlockSpec((block_b, D), lambda i: (i, 0)),
                # weights/biases: constant block index -> resident, single-buffered
                pl.BlockSpec((H, D, D), lambda i: (0, 0, 0), pipeline_mode=resident),
                pl.BlockSpec((H, 1, D), lambda i: (0, 0, 0), pipeline_mode=resident),
                pl.BlockSpec((D, Cp), lambda i: (0, 0), pipeline_mode=resident),
                pl.BlockSpec((1, Cp), lambda i: (0, 0), pipeline_mode=resident),
            ],
            out_specs=pl.BlockSpec((block_b, Cp), lambda i: (i, 0)),
        ),
        compiler_params=pltpu.CompilerParams(
            dimension_semantics=("parallel",),          # v7x: split batch across both TCs
            vmem_limit_bytes=vmem_limit,
        ),
        cost_estimate=pl.CostEstimate(
            flops=int(flops), transcendentals=0, bytes_accessed=int(bytes_accessed)),
    )(x, prepared["w1"], prepared["b1"], prepared["w2"], prepared["b2"])

    return out[:B, :C]


# ----------------------------------------------------------------------------
# Deterministic parameter construction (mirrors nn.Linear / nn.BatchNorm1d init)
# ----------------------------------------------------------------------------
def init_params(key, projection_dim, num_classes, head_size):
    D, C, H = projection_dim, num_classes, head_size
    keys = jax.random.split(key, 6)
    bound1 = 1.0 / jnp.sqrt(D)

    # MultiClassHead.linears[i] = Linear(D, D) + ReLU + BatchNorm1d(D)
    w1 = jax.random.uniform(keys[0], (H, D, D), jnp.float32, -bound1, bound1)
    b1 = jax.random.uniform(keys[1], (H, 1, D), jnp.float32, -bound1, bound1)

    # BatchNorm1d (eval mode): y = (x - mean) / sqrt(var + eps) * gamma + beta
    eps = 1e-5
    gamma = 1.0 + 0.1 * jax.random.normal(keys[2], (H, 1, D), jnp.float32)
    beta = 0.1 * jax.random.normal(keys[3], (H, 1, D), jnp.float32)
    running_mean = jnp.zeros((H, 1, D), jnp.float32)   # PyTorch init default
    running_var = jnp.ones((H, 1, D), jnp.float32)     # PyTorch init default
    bn_scale = gamma / jnp.sqrt(running_var + eps)
    bn_shift = beta - running_mean * bn_scale

    # MultiClassHead.linear2 = Linear(D, C)
    w2 = jax.random.uniform(keys[4], (D, C), jnp.float32, -bound1, bound1)
    b2 = jax.random.uniform(keys[5], (1, C), jnp.float32, -bound1, bound1)

    return {"w1": w1, "b1": b1, "bn_scale": bn_scale, "bn_shift": bn_shift,
            "w2": w2, "b2": b2}


# ----------------------------------------------------------------------------
# Pure-JAX references (for correctness checks)
# ----------------------------------------------------------------------------
def reference_head_f32(emb, params):
    """Original Linear->ReLU->BatchNorm stack in f32 (matches the PyTorch module)."""
    x = emb.astype(jnp.float32)
    H = params["w1"].shape[0]
    for h in range(H):
        x = jnp.maximum(x @ params["w1"][h] + params["b1"][h], 0.0)
        x = x * params["bn_scale"][h] + params["bn_shift"][h]
    return x @ params["w2"] + params["b2"]


def reference_head_kernel_math(emb, prepared):
    """Folded / bf16-activation / bf16-weight / f32-accumulate math — exactly what the
    kernel computes (fixes the previous mismatched 'padded' reference)."""
    x = emb.astype(jnp.bfloat16)
    H = prepared["w1"].shape[0]
    for h in range(H):
        acc = jnp.dot(x, prepared["w1"][h], preferred_element_type=jnp.float32)
        x = jnp.maximum(acc + prepared["b1"][h], 0.0).astype(jnp.bfloat16)
    out = jnp.dot(x, prepared["w2"], preferred_element_type=jnp.float32) + prepared["b2"]
    return out[:, :prepared["C"]]


if __name__ == "__main__":
    # Small shapes consistent with the module: EmbClassifier(projection_dim=32,
    # num_classes=10, head_size=2) operating on a batch of 8 embeddings (proj_h).
    B, projection_dim, num_classes, head_size = 8, 32, 10, 2

    key = jax.random.PRNGKey(0)
    k_emb, k_params = jax.random.split(key)
    emb = jax.random.normal(k_emb, (B, projection_dim), jnp.float32)  # proj_h
    params = init_params(k_params, projection_dim, num_classes, head_size)
    prepared = fold_and_prepare_params(params)

    scores = emb_classifier_head(emb, prepared)
    scores = jax.block_until_ready(scores)
    assert scores.shape == (B, num_classes)

    # Tight check vs the exact folded bf16 math the kernel implements.
    ref_exact = reference_head_kernel_math(emb, prepared)
    assert jnp.allclose(scores, ref_exact, atol=5e-3, rtol=5e-3), "mismatch vs kernel-math ref"

    # Loose check vs the original f32 Linear/ReLU/BatchNorm module (bf16 rounding only).
    ref_full = reference_head_f32(emb, params)
    assert jnp.allclose(scores, ref_full, atol=5e-2, rtol=5e-2), "mismatch vs f32 module ref"

    print("KERNEL_OK")
</pallas_src>

<mosaic_0001>
module attributes {stable_mosaic.version = 11 : i64} {
  func.func @_mlp_head_kernel(%arg0: i32, %arg1: memref<8x32xbf16, #tpu.memory_space<vmem>>, %arg2: memref<2x32x32xbf16, #tpu.memory_space<vmem>>, %arg3: memref<2x1x32xf32, #tpu.memory_space<vmem>>, %arg4: memref<32x128xbf16, #tpu.memory_space<vmem>>, %arg5: memref<1x128xf32, #tpu.memory_space<vmem>>, %arg6: memref<8x128xf32, #tpu.memory_space<vmem>>) attributes {dimension_semantics = [#tpu.dimension_semantics<parallel>], iteration_bounds = array<i64: 1>, scalar_prefetch = 0 : i64, scratch_operands = 0 : i64, tpu.core_type = #tpu.core_type<tc>, window_params = [{transform_indices = @transform_0, window_bounds = array<i64: 8, 32>}, {pipeline_mode = #tpu.pipeline_mode<synchronous>, transform_indices = @transform_1, window_bounds = array<i64: 2, 32, 32>}, {pipeline_mode = #tpu.pipeline_mode<synchronous>, transform_indices = @transform_2, window_bounds = array<i64: 2, 1, 32>}, {pipeline_mode = #tpu.pipeline_mode<synchronous>, transform_indices = @transform_3, window_bounds = array<i64: 32, 128>}, {pipeline_mode = #tpu.pipeline_mode<synchronous>, transform_indices = @transform_4, window_bounds = array<i64: 1, 128>}, {transform_indices = @transform_5, window_bounds = array<i64: 8, 128>}]} {
    %c0 = arith.constant 0 : index
    %c0_0 = arith.constant 0 : index
    %0 = vector.load %arg1[%c0, %c0_0] : memref<8x32xbf16, #tpu.memory_space<vmem>>, vector<8x32xbf16>
    %c0_1 = arith.constant 0 : index
    %c0_2 = arith.constant 0 : index
    %c0_3 = arith.constant 0 : index
    %1 = vector.load %arg2[%c0_1, %c0_2, %c0_3] : memref<2x32x32xbf16, #tpu.memory_space<vmem>>, vector<1x32x32xbf16>
    %2 = vector.shape_cast %1 : vector<1x32x32xbf16> to vector<32x32xbf16>
    %cst = arith.constant dense<0.000000e+00> : vector<8x32xf32>
    %3 = tpu.matmul %0, %2, %cst {dimension_numbers = #tpu.dot_dimension_numbers<[1], [0], [0], [1], [0, 0, 1, 1], [], []>} : vector<8x32xbf16>, vector<32x32xbf16>, vector<8x32xf32> -> vector<8x32xf32>
    %c0_4 = arith.constant 0 : index
    %c0_5 = arith.constant 0 : index
    %c0_6 = arith.constant 0 : index
    %4 = vector.load %arg3[%c0_4, %c0_5, %c0_6] : memref<2x1x32xf32, #tpu.memory_space<vmem>>, vector<1x1x32xf32>
    %5 = vector.shape_cast %4 : vector<1x1x32xf32> to vector<1x32xf32>
    %6 = vector.broadcast %5 : vector<1x32xf32> to vector<8x32xf32>
    %7 = arith.addf %3, %6 : vector<8x32xf32>
    %cst_7 = arith.constant 0.000000e+00 : f32
    %8 = vector.broadcast %cst_7 : f32 to vector<8x32xf32>
    %9 = arith.maximumf %7, %8 : vector<8x32xf32>
    %10 = arith.truncf %9 : vector<8x32xf32> to vector<8x32xbf16>
    %c1 = arith.constant 1 : index
    %c0_8 = arith.constant 0 : index
    %c0_9 = arith.constant 0 : index
    %11 = vector.load %arg2[%c1, %c0_8, %c0_9] : memref<2x32x32xbf16, #tpu.memory_space<vmem>>, vector<1x32x32xbf16>
    %12 = vector.shape_cast %11 : vector<1x32x32xbf16> to vector<32x32xbf16>
    %cst_10 = arith.constant dense<0.000000e+00> : vector<8x32xf32>
    %13 = tpu.matmul %10, %12, %cst_10 {dimension_numbers = #tpu.dot_dimension_numbers<[1], [0], [0], [1], [0, 0, 1, 1], [], []>} : vector<8x32xbf16>, vector<32x32xbf16>, vector<8x32xf32> -> vector<8x32xf32>
    %c1_11 = arith.constant 1 : index
    %c0_12 = arith.constant 0 : index
    %c0_13 = arith.constant 0 : index
    %14 = vector.load %arg3[%c1_11, %c0_12, %c0_13] : memref<2x1x32xf32, #tpu.memory_space<vmem>>, vector<1x1x32xf32>
    %15 = vector.shape_cast %14 : vector<1x1x32xf32> to vector<1x32xf32>
    %16 = vector.broadcast %15 : vector<1x32xf32> to vector<8x32xf32>
    %17 = arith.addf %13, %16 : vector<8x32xf32>
    %cst_14 = arith.constant 0.000000e+00 : f32
    %18 = vector.broadcast %cst_14 : f32 to vector<8x32xf32>
    %19 = arith.maximumf %17, %18 : vector<8x32xf32>
    %20 = arith.truncf %19 : vector<8x32xf32> to vector<8x32xbf16>
    %c0_15 = arith.constant 0 : index
    %c0_16 = arith.constant 0 : index
    %21 = vector.load %arg4[%c0_15, %c0_16] : memref<32x128xbf16, #tpu.memory_space<vmem>>, vector<32x128xbf16>
    %cst_17 = arith.constant dense<0.000000e+00> : vector<8x128xf32>
    %22 = tpu.matmul %20, %21, %cst_17 {dimension_numbers = #tpu.dot_dimension_numbers<[1], [0], [0], [1], [0, 0, 1, 1], [], []>} : vector<8x32xbf16>, vector<32x128xbf16>, vector<8x128xf32> -> vector<8x128xf32>
    %c0_18 = arith.constant 0 : index
    %c0_19 = arith.constant 0 : index
    %23 = vector.load %arg5[%c0_18, %c0_19] : memref<1x128xf32, #tpu.memory_space<vmem>>, vector<1x128xf32>
    %24 = vector.broadcast %23 : vector<1x128xf32> to vector<8x128xf32>
    %25 = arith.addf %22, %24 : vector<8x128xf32>
    %c0_20 = arith.constant 0 : index
    %c0_21 = arith.constant 0 : index
    %26 = vector.load %arg6[%c0_20, %c0_21] : memref<8x128xf32, #tpu.memory_space<vmem>>, vector<8x128xf32>
    tpu.vector_store %arg6[%c0_20, %c0_21], %25 {strides = array<i32>} : memref<8x128xf32, #tpu.memory_space<vmem>>, vector<8x128xf32>,
    return
  }
  func.func @transform_0(%arg0: i32) -> (i32, i32) {
    %c0_i32 = arith.constant 0 : i32
    %c0_i32_0 = arith.constant 0 : i32
    return %arg0, %c0_i32 : i32, i32
  }
  func.func @transform_1(%arg0: i32) -> (i32, i32, i32) {
    %c0_i32 = arith.constant 0 : i32
    %c0_i32_0 = arith.constant 0 : i32
    %c0_i32_1 = arith.constant 0 : i32
    %c0_i32_2 = arith.constant 0 : i32
    return %c0_i32, %c0_i32_0, %c0_i32_1 : i32, i32, i32
  }
  func.func @transform_2(%arg0: i32) -> (i32, i32, i32) {
    %c0_i32 = arith.constant 0 : i32
    %c0_i32_0 = arith.constant 0 : i32
    %c0_i32_1 = arith.constant 0 : i32
    %c0_i32_2 = arith.constant 0 : i32
    return %c0_i32, %c0_i32_0, %c0_i32_1 : i32, i32, i32
  }
  func.func @transform_3(%arg0: i32) -> (i32, i32) {
    %c0_i32 = arith.constant 0 : i32
    %c0_i32_0 = arith.constant 0 : i32
    %c0_i32_1 = arith.constant 0 : i32
    return %c0_i32, %c0_i32_0 : i32, i32
  }
  func.func @transform_4(%arg0: i32) -> (i32, i32) {
    %c0_i32 = arith.constant 0 : i32
    %c0_i32_0 = arith.constant 0 : i32
    %c0_i32_1 = arith.constant 0 : i32
    return %c0_i32, %c0_i32_0 : i32, i32
  }
  func.func @transform_5(%arg0: i32) -> (i32, i32) {
    %c0_i32 = arith.constant 0 : i32
    %c0_i32_0 = arith.constant 0 : i32
    return %arg0, %c0_i32 : i32, i32
  }
}

</mosaic_0001>

<bundles_post_ra>
// kernel: tpu_custom_call.1
= control target key start
LH: loop header
LB: loop body
LE: loop exit
PB: predicated region body
PF: predicated region fallthrough
CT: control target
= control target key end

     0   :  { %10 = vsyncpa [#allocation3], 0  ;;  %s542_s0 = inlined_call_operand.hbm [shape: bf16[8,32], index: 0, kind: input, shape index: {}]   ;;  %s543_s1 = inlined_call_operand.hbm [shape: bf16[2,32,32], index: 1, kind: input, shape index: {}]   ;;  %s544_s2 = inlined_call_operand.vmem [shape: f32[2,1,32], index: 2, kind: input, shape index: {}]   ;;  %s545_s3 = inlined_call_operand.hbm [shape: bf16[32,128], index: 3, kind: input, shape index: {}]   ;;  %s546_s4 = inlined_call_operand.vmem [shape: f32[1,128], index: 4, kind: input, shape index: {}]   ;;  %s547_s5 = inlined_call_operand.hbm [shape: f32[8,128], index: 5, kind: output, shape index: {}]  }
   0x1   :  { %11 = vsyncpa [#allocation6], 0 }
   0x2   :  { %12 = vsyncpa [#allocation4], 0  ;;  %s438_s18 = smov [#allocation5]   ;;  %s344_s22 = scalar_lea.hbm %s543_s1, 512 }
   0x3   :  { %s28_s19 = sshll.u32 %s438_s18, 4  ;;  %p345_p0 = scmp.ne.s32.totalorder %s543_s1, %s344_s22  ;;  %s29_s19 = int_to_ptr.vmem [resolvable:$true] %s28_s19 }
   0x4   :  { %p348_p1 = scmp.lt.u32.totalorder %s344_s22, %s543_s1 }
   0x6   :  { %p350_p2 = pnand %p348_p1, %p345_p0 }
   0x8   :  { %353 = shalt.err (!%p350_p2)
}
   0x9   :  { %s354_s27 = scalar_lea.vmem %s29_s19, 512  ;;  %p359_p4 = scmp.lt.s32.totalorder %s29_s19, %s29_s19 }
   0xa   :  { %p355_p3 = scmp.ne.s32.totalorder %s29_s19, %s354_s27  ;;  %p360_p5 = scmp.lt.s32.totalorder %s354_s27, %s354_s27 }
   0xc   :  { %p361_p6 = por %p360_p5, %p359_p4 }
   0xe   :  { %p362_p7 = pnand %p361_p6, %p355_p3 }
  0x10   :  { %365 = shalt.err (!%p362_p7)
}
  0x11   :  { %s439_s28 = smov 64   ;;  %s440_s29 = smov 4  }
  0x12   :  { %34 = dma.hbm_to_vmem [thread:$0]  %s543_s1, 512, %s29_s19, [#allocation6], %s439_s28, %s439_s28, %s440_s29  }
  0x13   :  { %s441_s7 = smov [#allocation2]   ;;  %s442_s9 = smov [#allocation7]  }
  0x14   :  { %s19_s8 = sshll.u32 %s441_s7, 4  ;;  %s42_s10 = sshll.u32 %s442_s9, 4  ;;  %s20_s8 = int_to_ptr.vmem [resolvable:$true] %s19_s8  ;;  %s43_s10 = int_to_ptr.vmem [resolvable:$true] %s42_s10 }
  0x15   :  { %s366_s13 = scalar_lea.hbm %s542_s0, 64 }
  0x16   :  { %p367_p8 = scmp.ne.s32.totalorder %s542_s0, %s366_s13  ;;  %p370_p9 = scmp.lt.u32.totalorder %s366_s13, %s542_s0 }
  0x18   :  { %p372_p10 = pnand %p370_p9, %p367_p8 }
  0x1a   :  { %375 = shalt.err (!%p372_p10)
}
  0x1b   :  { %s376_s1 = scalar_lea.vmem %s20_s8, 64  ;;  %p381_p12 = scmp.lt.s32.totalorder %s20_s8, %s20_s8 }
  0x1c   :  { %p377_p11 = scmp.ne.s32.totalorder %s20_s8, %s376_s1  ;;  %p382_p13 = scmp.lt.s32.totalorder %s376_s1, %s376_s1 }
  0x1e   :  { %p383_p0 = por %p382_p13, %p381_p12 }
  0x20   :  { %p384_p1 = pnand %p383_p0, %p377_p11 }
  0x22   :  { %387 = shalt.err (!%p384_p1)
}
  0x23   :  { %22 = dma.hbm_to_vmem [thread:$0]  %s542_s0, 64, %s20_s8, [#allocation3]  }
  0x24   :  { %s388_s22 = scalar_lea.hbm %s545_s3, 256 }
  0x25   :  { %p389_p2 = scmp.ne.s32.totalorder %s545_s3, %s388_s22  ;;  %p392_p3 = scmp.lt.u32.totalorder %s388_s22, %s545_s3 }
  0x27   :  { %p394_p4 = pnand %p392_p3, %p389_p2 }
  0x29   :  { %397 = shalt.err (!%p394_p4)
}
  0x2a   :  { %s398_s27 = scalar_lea.vmem %s43_s10, 256  ;;  %p403_p6 = scmp.lt.s32.totalorder %s43_s10, %s43_s10 }
  0x2b   :  { %p399_p5 = scmp.ne.s32.totalorder %s43_s10, %s398_s27  ;;  %p404_p7 = scmp.lt.s32.totalorder %s398_s27, %s398_s27 }
  0x2d   :  { %p405_p8 = por %p404_p7, %p403_p6 }
  0x2f   :  { %p406_p9 = pnand %p405_p8, %p399_p5 }
  0x31   :  { %409 = shalt.err (!%p406_p9)
}
  0x32   :  { %48 = dma.hbm_to_vmem [thread:$0]  %s545_s3, 256, %s43_s10, [#allocation6], %s439_s28, %s439_s28, %s440_s29  }
  0x33   :  { %432 = dma.done.wait [#allocation3], 64  }
  0x34   :  { %433 = vsyncadd [#allocation3], 4294967232 }
  0x35   :  { %434 = dma.done.wait [#allocation6], 768  }
  0x36   :  { %435 = vsyncadd [#allocation6], 4294966528  ;;  %v443_v0 = vmov 0.0   ;;  %vm444_vm0 = vmmov 0   ;;  %v338_v1 = vld [vmem:[#allocation5] sm:$0xff]   ;;  %v339_v2 = vld [vmem:[#allocation5 + $0x8] sm:$0xff]  }
  0x37   :  { %306 = vmatprep.subr.bf16.mxu0 %v443_v0  ;;  %310 = vmatprep.mubr.msk.bf16.mxu0 %vm444_vm0, %v443_v0  ;;  %v61_v3 = vld [vmem:[#allocation2] sm:$0xf]  ;;  %vm85_vm1 = vcmask 261120   ;;  %v340_v4 = vld [vmem:[#allocation5 + $0x10] sm:$0xff]   ;;  %v342_v6 = vld [vmem:[#allocation7] sm:$0xff]   ;;  %s445_s9 = smov [#allocation8]  }
  0x38   :  { %314 = vmatprep.subr.bf16.mxu1 %v443_v0  ;;  %318 = vmatprep.mubr.msk.bf16.mxu1 %vm444_vm0, %v443_v0  ;;  %v341_v5 = vld [vmem:[#allocation5 + $0x18] sm:$0xff]   ;;  %v343_v15 = vld [vmem:[#allocation7 + $0x8] sm:$0xff]   ;;  %s274_s10 = sshll.u32 %s445_s9, 4  ;;  %s275_s10 = int_to_ptr.vmem [resolvable:$true] %s274_s10 }
  0x39   :  { %307 = vmatpush3.bf16.msra.mxu0 %v338_v1  ;;  %315 = vmatpush3.bf16.msra.mxu1 %v340_v4  ;;  %v284_v7 = vld [vmem:[%s544_s2] ss:$0 sm:$0xff]  ;;  %v289_v16 = vld [vmem:[%s544_s2 + $0x1] ss:$0 sm:$0xff]  ;;  %s410_s2 = scalar_lea.vmem %s275_s10, 128  ;;  %p415_p11 = scmp.lt.s32.totalorder %s275_s10, %s275_s10 }
  0x3a   :  { %308 = vmatprep.subr.bf16.mxu0 %v443_v0  ;;  %316 = vmatprep.subr.bf16.mxu1 %v443_v0  ;;  %v293_v24 = vld [vmem:[%s546_s4] ss:$0 sm:$0xff]  ;;  %p411_p10 = scmp.ne.s32.totalorder %s275_s10, %s410_s2  ;;  %p416_p12 = scmp.lt.s32.totalorder %s410_s2, %s410_s2 }
  0x3c   :  { %p417_p13 = por %p416_p12, %p415_p11 }
  0x3d   :  { %309 = vmatpush3.bf16.msra.mxu0 %v339_v2  ;;  %317 = vmatpush3.bf16.msra.mxu1 %v341_v5 }
  0x3e   :  { %322 = vmatprep.subr.bf16.mxu0 %v443_v0  ;;  %p418_p0 = pnand %p417_p13, %p411_p10 }
  0x40   :  { %311 = vmatmul.mubr.msk.bf16.vlgmr.msra.gmra.mrb[0].mxu0 %vm85_vm1, %v61_v3 }
  0x41   :  { %326 = vmatprep.mubr.msk.bf16.mxu0 %vm444_vm0, %v443_v0  ;;  %323 = vmatpush3.bf16.msra.mxu0 %v342_v6 }
  0x42   :  { %324 = vmatprep.subr.bf16.mxu0 %v443_v0 }
  0x45   :  { %325 = vmatpush3.bf16.msra.mxu0 %v343_v15 }
 0x113   :  { %v123_v8 = vpop.f32.mrb[0].mxu0 }
 0x114   :  { %v124_v9 = vadd.f32 %v284_v7, %v123_v8  ;;  %v312_v10 = vpop.f32.mrb[1].mxu0 }
 0x115   :  { %v126_v11 = vpop.f32.mrb[2].mxu0 }
 0x116   :  { %v129_v12 = vmax.f32 %v124_v9, 0.0  ;;  %v313_v13 = vpop.f32.mrb[3].mxu0 }
 0x118   :  { %v130_v14 = vpack.c.bf16 %v129_v12, %v129_v12 }
 0x11a   :  { %319 = vmatmul.mubr.msk.bf16.vlgmr.msra.gmra.mrb[0].mxu1 %vm85_vm1, %v130_v14 }
 0x1ed   :  { %v193_v17 = vpop.f32.mrb[0].mxu1 }
 0x1ee   :  { %v194_v18 = vadd.f32 %v289_v16, %v193_v17  ;;  %v320_v19 = vpop.f32.mrb[1].mxu1 }
 0x1ef   :  { %v196_v20 = vpop.f32.mrb[2].mxu1 }
 0x1f0   :  { %v199_v21 = vmax.f32 %v194_v18, 0.0  ;;  %v321_v22 = vpop.f32.mrb[3].mxu1 }
 0x1f2   :  { %v200_v23 = vpack.c.bf16 %v199_v21, %v199_v21 }
 0x1f4   :  { %327 = vmatmul.mubr.msk.bf16.vlgmr.msra.gmra.mrb[4].mxu0 %vm85_vm1, %v200_v23 }
 0x2c7   :  { %v261_v25 = vpop.f32.mrb[4].mxu0 }
 0x2c8   :  { %v262_v26 = vadd.f32 %v293_v24, %v261_v25  ;;  %v328_v27 = vpop.f32.mrb[5].mxu0 }
 0x2c9   :  { %v264_v28 = vpop.f32.mrb[6].mxu0 }
 0x2ca   :  { %267 = vst [vmem:[#allocation8] sm:$0xff] %v262_v26  ;;  %v329_v29 = vpop.f32.mrb[7].mxu0 }
 0x2cb   :  { %421 = shalt.err (!%p418_p0)
}
 0x2cc   :  { %s422_s4 = scalar_lea.hbm %s547_s5, 128 }
 0x2cd   :  { %p423_p1 = scmp.ne.s32.totalorder %s547_s5, %s422_s4  ;;  %p426_p2 = scmp.lt.u32.totalorder %s422_s4, %s547_s5 }
 0x2cf   :  { %p428_p3 = pnand %p426_p2, %p423_p1 }
 0x2d1   :  { %431 = shalt.err (!%p428_p3)
}
 0x2d2   :  { %277 = dma.vmem_to_hbm [thread:$0]  %s275_s10, 128, %s547_s5, [#allocation4]  }
 0x2d3   :  { %436 = dma.done.wait [#allocation4], 128  }
 0x2d4   :  { %437 = vsyncadd [#allocation4], 4294967168 }
 0x2d5   :  { %281 = vsyncpa [#allocation3], 1 }
 0x2d6   :  { %282 = vsyncpa [#allocation6], 1 }
 0x2d7   :  { %283 = vsyncpa [#allocation4], 1 }

</bundles_post_ra>
